<compile_context>
chip_gen: v5e
topology: v5e:2x2
jax: 0.10.0
libtpu: 0.0.40
codegen_flags: <defaults>
</compile_context>

<pallas_src>
import jax
import jax.numpy as jnp
from jax.experimental import pallas as pl
from jax.experimental.pallas import tpu as pltpu


def _round_up(x, m):
    return ((x + m - 1) // m) * m


def _make_kernel(num_mid, hidden_dims, latent_dims, hid_pad, latent_pad):
    """Kernel closure for a fixed (static) number of mid layers / static dims.

    Everything is in the transposed (lane-dense) layout: batch on lanes.
      refs: xt, epst, wt_in, [wt_mid...], wt_head, b_all  ->  zt, kl_partial
    """

    def kernel(*refs):
        xt_ref, epst_ref = refs[0], refs[1]
        wt_in_ref = refs[2]
        mid_refs = refs[3:3 + num_mid]
        wt_head_ref = refs[3 + num_mid]
        b_ref = refs[4 + num_mid]
        zt_ref, kl_ref = refs[5 + num_mid], refs[6 + num_mid]

        b_all = b_ref[...]                        # (total_bias, 1) packed column

        # ---- input layer + relu: h = relu(W_in^T @ x^T + b_in) -> (hidden, TB)
        off = 0
        h = jnp.dot(wt_in_ref[...], xt_ref[...],
                    preferred_element_type=jnp.float32)
        h = jnp.maximum(h + b_all[off:off + hidden_dims, :], 0.0)
        off += hid_pad

        # ---- mid layers (statically unrolled; empty for layers=2) ----
        for w_ref in mid_refs:
            h = jnp.dot(w_ref[...], h, preferred_element_type=jnp.float32)
            h = jnp.maximum(h + b_all[off:off + hidden_dims, :], 0.0)
            off += hid_pad

        # ---- fused, sublane-aligned heads: one matmul -> (2*latent_pad, TB)
        #      rows [0:latent)              = mu
        #      rows [latent_pad:latent_pad+latent) = log_sigma
        heads = jnp.dot(wt_head_ref[...], h, preferred_element_type=jnp.float32)
        heads = heads + b_all[off:off + 2 * latent_pad, :]
        mu = heads[:latent_dims, :]
        log_sigma = heads[latent_pad:latent_pad + latent_dims, :]
        sigma = jnp.exp(log_sigma)

        # ---- reparameterization (lane-dense, unmasked full-width store) ----
        zt_ref[...] = mu + sigma * epst_ref[...]

        # ---- per-example KL partial (sublane reduce over latent); the "-0.5"
        #      term is folded into a scalar correction in the wrapper. ----
        contrib = sigma * sigma + mu * mu - log_sigma          # (latent, TB)
        kl_ref[...] = jnp.sum(contrib, axis=0, keepdims=True)  # (1, TB)

    return kernel


def variational_encoder_forward(x, params, eps, *, block_b=4096):
    """x: (B, input_dims) f32.  params: dict of (in,out) weights / (1,out) biases.
    eps: (B, latent_dims) f32 standard-normal noise (plays torch.randn_like).
    Returns (z, kl): z (B, latent_dims) f32, kl scalar."""
    B, input_dims = x.shape
    hidden_dims = params["w_in"].shape[1]
    latent_dims = params["w_mu"].shape[1]
    num_mid = len(params["mid_w"])
    hid_pad = _round_up(hidden_dims, 8)
    latent_pad = _round_up(latent_dims, 8)

    def pad_rows(a, rows):
        return jnp.pad(a, ((0, rows - a.shape[0]), (0, 0)))

    # ---- lane-dense (transposed) weights; fused + sublane-aligned heads ----
    wt_in = params["w_in"].T                                   # (hidden, input)
    wt_mid = [w.T for w in params["mid_w"]]                    # (hidden, hidden)
    wt_head = jnp.concatenate(
        [pad_rows(params["w_mu"].T, latent_pad),
         pad_rows(params["w_sigma"].T, latent_pad)], axis=0)   # (2*latent_pad, hidden)

    # packed bias column; every segment padded to an 8-sublane boundary so the
    # in-kernel slices are tile-aligned zero-cost views.
    b_segs = [pad_rows(params["b_in"].T, hid_pad)]
    b_segs += [pad_rows(b.T, hid_pad) for b in params["mid_b"]]
    b_segs.append(jnp.concatenate(
        [pad_rows(params["b_mu"].T, latent_pad),
         pad_rows(params["b_sigma"].T, latent_pad)], axis=0))
    b_all = jnp.concatenate(b_segs, axis=0)                    # (total_bias, 1)

    # ---- batch tiling (batch on lanes) ----
    if B <= block_b:
        tb, b_cols, num_blocks = B, B, 1          # single full block, no padding
    else:
        tb = _round_up(block_b, 128)              # lane-aligned tile
        b_cols = _round_up(B, tb)
        num_blocks = b_cols // tb

    xt = x.T                                       # (input_dims, B)
    epst = eps.T                                   # (latent_dims, B)
    if b_cols != B:
        xt = jnp.pad(xt, ((0, 0), (0, b_cols - B)))
        epst = jnp.pad(epst, ((0, 0), (0, b_cols - B)))

    kernel = _make_kernel(num_mid, hidden_dims, latent_dims, hid_pad, latent_pad)

    def resident():  # whole array kept VMEM-resident across the grid
        return pl.BlockSpec(memory_space=pltpu.MemorySpace.VMEM)

    in_specs = ([pl.BlockSpec((input_dims, tb), lambda i: (0, i)),   # x^T  (pipelined)
                 pl.BlockSpec((latent_dims, tb), lambda i: (0, i)),  # eps^T (pipelined)
                 resident()]                                         # wt_in
                + [resident() for _ in range(num_mid)]               # mid weights
                + [resident(), resident()])                          # wt_head, b_all

    zt, kl_rows = pl.pallas_call(
        kernel,
        grid=(num_blocks,),
        out_shape=(
            jax.ShapeDtypeStruct((latent_dims, b_cols), jnp.float32),  # z^T
            jax.ShapeDtypeStruct((1, b_cols), jnp.float32),            # per-example KL
        ),
        in_specs=in_specs,
        out_specs=(
            pl.BlockSpec((latent_dims, tb), lambda i: (0, i)),
            pl.BlockSpec((1, tb), lambda i: (0, i)),
        ),
        # No cross-grid accumulator -> the batch axis is safely "parallel"
        # (lets v7x shard grid steps across its two TensorCores).
        compiler_params=pltpu.CompilerParams(
            dimension_semantics=("parallel",)),
    )(xt, epst, wt_in, *wt_mid, wt_head, b_all)

    z = zt[:, :B].T
    kl = jnp.sum(kl_rows[0, :B]) - 0.5 * B * latent_dims   # "-0.5" correction
    return z, kl


def init_params(key, latent_dims=2, hidden_dims=8, input_dims=6, layers=2):
    """Deterministic init mimicking torch.nn.Linear default (U(-1/sqrt(fan_in), +))."""
    def linear(k, fan_in, fan_out):
        kw, kb = jax.random.split(k)
        bound = 1.0 / jnp.sqrt(fan_in)
        w = jax.random.uniform(kw, (fan_in, fan_out), jnp.float32, -bound, bound)
        b = jax.random.uniform(kb, (1, fan_out), jnp.float32, -bound, bound)
        return w, b

    n_mid = max(layers - 2, 0)
    keys = jax.random.split(key, 3 + max(n_mid, 1))
    w_in, b_in = linear(keys[0], input_dims, hidden_dims)
    mid_w, mid_b = [], []
    for i in range(n_mid):
        w, b = linear(keys[3 + i], hidden_dims, hidden_dims)
        mid_w.append(w)
        mid_b.append(b)
    w_mu, b_mu = linear(keys[1], hidden_dims, latent_dims)
    w_sigma, b_sigma = linear(keys[2], hidden_dims, latent_dims)
    return dict(w_in=w_in, b_in=b_in, mid_w=mid_w, mid_b=mid_b,
                w_mu=w_mu, b_mu=b_mu, w_sigma=w_sigma, b_sigma=b_sigma)


def _reference(x, params, eps):
    h = jnp.maximum(x @ params["w_in"] + params["b_in"], 0.0)
    for w, b in zip(params["mid_w"], params["mid_b"]):
        h = jnp.maximum(h @ w + b, 0.0)
    mu = h @ params["w_mu"] + params["b_mu"]
    log_sigma = h @ params["w_sigma"] + params["b_sigma"]
    sigma = jnp.exp(log_sigma)
    z = mu + sigma * eps
    kl = jnp.sum(sigma ** 2 + mu ** 2 - log_sigma - 0.5)
    return z, kl


if __name__ == "__main__":
    key = jax.random.PRNGKey(0)
    k_x, k_p, k_eps, k_x2, k_eps2 = jax.random.split(key, 5)

    B, input_dims, hidden_dims, latent_dims, layers = 8, 6, 8, 2, 2

    x = jax.random.normal(k_x, (B, input_dims), jnp.float32)
    params = init_params(k_p, latent_dims, hidden_dims, input_dims, layers)
    # eps plays the role of torch.randn_like(sigma); supplied as an input so the
    # kernel output can be checked exactly against the pure-JAX reference.
    eps = jax.random.normal(k_eps, (B, latent_dims), jnp.float32)

    z, kl = variational_encoder_forward(x, params, eps)
    z = jax.block_until_ready(z)
    kl = jax.block_until_ready(kl)

    z_ref, kl_ref = _reference(x, params, eps)
    assert z.shape == (B, latent_dims)
    assert jnp.allclose(z, z_ref, atol=1e-5, rtol=1e-5)
    assert jnp.allclose(kl, kl_ref, atol=1e-4, rtol=1e-5)

    # Exercise the multi-block (tiled, lane-padded) path as well.
    B2 = 300
    x2 = jax.random.normal(k_x2, (B2, input_dims), jnp.float32)
    eps2 = jax.random.normal(k_eps2, (B2, latent_dims), jnp.float32)
    z2, kl2 = variational_encoder_forward(x2, params, eps2, block_b=128)
    z2 = jax.block_until_ready(z2)
    kl2 = jax.block_until_ready(kl2)
    z2_ref, kl2_ref = _reference(x2, params, eps2)
    assert z2.shape == (B2, latent_dims)
    assert jnp.allclose(z2, z2_ref, atol=1e-5, rtol=1e-5)
    assert jnp.allclose(kl2, kl2_ref, atol=1e-3, rtol=1e-5)

    print("KERNEL_OK")
</pallas_src>

<mosaic_0001>
module attributes {stable_mosaic.version = 11 : i64} {
  func.func @kernel(%arg0: i32, %arg1: memref<6x8xf32, #tpu.memory_space<vmem>>, %arg2: memref<2x8xf32, #tpu.memory_space<vmem>>, %arg3: memref<8x6xf32, #tpu.memory_space<vmem>>, %arg4: memref<16x8xf32, #tpu.memory_space<vmem>>, %arg5: memref<24x1xf32, #tpu.memory_space<vmem>>, %arg6: memref<2x8xf32, #tpu.memory_space<vmem>>, %arg7: memref<1x8xf32, #tpu.memory_space<vmem>>) attributes {dimension_semantics = [#tpu.dimension_semantics<parallel>], iteration_bounds = array<i64: 1>, scalar_prefetch = 0 : i64, scratch_operands = 0 : i64, tpu.core_type = #tpu.core_type<tc>, window_params = [{transform_indices = @transform_0, window_bounds = array<i64: 6, 8>}, {transform_indices = @transform_1, window_bounds = array<i64: 2, 8>}, {pipeline_mode = #tpu.pipeline_mode<synchronous>, transform_indices = @transform_2, window_bounds = array<i64: 8, 6>}, {pipeline_mode = #tpu.pipeline_mode<synchronous>, transform_indices = @transform_3, window_bounds = array<i64: 16, 8>}, {pipeline_mode = #tpu.pipeline_mode<synchronous>, transform_indices = @transform_4, window_bounds = array<i64: 24, 1>}, {transform_indices = @transform_5, window_bounds = array<i64: 2, 8>}, {transform_indices = @transform_6, window_bounds = array<i64: 1, 8>}]} {
    %c0 = arith.constant 0 : index
    %c0_0 = arith.constant 0 : index
    %0 = vector.load %arg5[%c0, %c0_0] : memref<24x1xf32, #tpu.memory_space<vmem>>, vector<24x1xf32>
    %c0_1 = arith.constant 0 : index
    %c0_2 = arith.constant 0 : index
    %1 = vector.load %arg3[%c0_1, %c0_2] : memref<8x6xf32, #tpu.memory_space<vmem>>, vector<8x6xf32>
    %c0_3 = arith.constant 0 : index
    %c0_4 = arith.constant 0 : index
    %2 = vector.load %arg1[%c0_3, %c0_4] : memref<6x8xf32, #tpu.memory_space<vmem>>, vector<6x8xf32>
    %cst = arith.constant dense<0.000000e+00> : vector<8x8xf32>
    %3 = tpu.matmul %1, %2, %cst {dimension_numbers = #tpu.dot_dimension_numbers<[1], [0], [0], [1], [0, 0, 1, 1], [], []>} : vector<8x6xf32>, vector<6x8xf32>, vector<8x8xf32> -> vector<8x8xf32>
    %4 = vector.extract_strided_slice %0 {offsets = [0, 0], sizes = [8, 1], strides = [1, 1]} : vector<24x1xf32> to vector<8x1xf32>
    %5 = vector.broadcast %4 : vector<8x1xf32> to vector<8x8xf32>
    %6 = arith.addf %3, %5 : vector<8x8xf32>
    %cst_5 = arith.constant 0.000000e+00 : f32
    %7 = vector.broadcast %cst_5 : f32 to vector<8x8xf32>
    %8 = arith.maximumf %6, %7 : vector<8x8xf32>
    %c0_6 = arith.constant 0 : index
    %c0_7 = arith.constant 0 : index
    %9 = vector.load %arg4[%c0_6, %c0_7] : memref<16x8xf32, #tpu.memory_space<vmem>>, vector<16x8xf32>
    %cst_8 = arith.constant dense<0.000000e+00> : vector<16x8xf32>
    %10 = tpu.matmul %9, %8, %cst_8 {dimension_numbers = #tpu.dot_dimension_numbers<[1], [0], [0], [1], [0, 0, 1, 1], [], []>} : vector<16x8xf32>, vector<8x8xf32>, vector<16x8xf32> -> vector<16x8xf32>
    %11 = vector.extract_strided_slice %0 {offsets = [8, 0], sizes = [16, 1], strides = [1, 1]} : vector<24x1xf32> to vector<16x1xf32>
    %12 = vector.broadcast %11 : vector<16x1xf32> to vector<16x8xf32>
    %13 = arith.addf %10, %12 : vector<16x8xf32>
    %14 = vector.extract_strided_slice %13 {offsets = [0, 0], sizes = [2, 8], strides = [1, 1]} : vector<16x8xf32> to vector<2x8xf32>
    %15 = vector.extract_strided_slice %13 {offsets = [8, 0], sizes = [2, 8], strides = [1, 1]} : vector<16x8xf32> to vector<2x8xf32>
    %16 = math.exp %15 : vector<2x8xf32>
    %c0_9 = arith.constant 0 : index
    %c0_10 = arith.constant 0 : index
    %17 = vector.load %arg2[%c0_9, %c0_10] : memref<2x8xf32, #tpu.memory_space<vmem>>, vector<2x8xf32>
    %18 = arith.mulf %16, %17 : vector<2x8xf32>
    %19 = arith.addf %14, %18 : vector<2x8xf32>
    %c0_11 = arith.constant 0 : index
    %c0_12 = arith.constant 0 : index
    %20 = vector.load %arg6[%c0_11, %c0_12] : memref<2x8xf32, #tpu.memory_space<vmem>>, vector<2x8xf32>
    tpu.vector_store %arg6[%c0_11, %c0_12], %19 {strides = array<i32>} : memref<2x8xf32, #tpu.memory_space<vmem>>, vector<2x8xf32>,
    %21 = arith.mulf %16, %16 : vector<2x8xf32>
    %22 = arith.mulf %14, %14 : vector<2x8xf32>
    %23 = arith.addf %21, %22 : vector<2x8xf32>
    %24 = arith.subf %23, %15 : vector<2x8xf32>
    %cst_13 = arith.constant dense<0.000000e+00> : vector<8xf32>
    %25 = vector.multi_reduction <add>, %24, %cst_13 [0] : vector<2x8xf32> to vector<8xf32>
    %26 = vector.shape_cast %25 : vector<8xf32> to vector<1x8xf32>
    %c0_14 = arith.constant 0 : index
    %c0_15 = arith.constant 0 : index
    %27 = vector.load %arg7[%c0_14, %c0_15] : memref<1x8xf32, #tpu.memory_space<vmem>>, vector<1x8xf32>
    tpu.vector_store %arg7[%c0_14, %c0_15], %26 {strides = array<i32>} : memref<1x8xf32, #tpu.memory_space<vmem>>, vector<1x8xf32>,
    return
  }
  func.func @transform_0(%arg0: i32) -> (i32, i32) {
    %c0_i32 = arith.constant 0 : i32
    %c0_i32_0 = arith.constant 0 : i32
    return %c0_i32, %arg0 : i32, i32
  }
  func.func @transform_1(%arg0: i32) -> (i32, i32) {
    %c0_i32 = arith.constant 0 : i32
    %c0_i32_0 = arith.constant 0 : i32
    return %c0_i32, %arg0 : i32, i32
  }
  func.func @transform_2(%arg0: i32) -> (i32, i32) {
    %c0_i32 = arith.constant 0 : i32
    %c0_i32_0 = arith.constant 0 : i32
    %c0_i32_1 = arith.constant 0 : i32
    return %c0_i32, %c0_i32_0 : i32, i32
  }
  func.func @transform_3(%arg0: i32) -> (i32, i32) {
    %c0_i32 = arith.constant 0 : i32
    %c0_i32_0 = arith.constant 0 : i32
    %c0_i32_1 = arith.constant 0 : i32
    return %c0_i32, %c0_i32_0 : i32, i32
  }
  func.func @transform_4(%arg0: i32) -> (i32, i32) {
    %c0_i32 = arith.constant 0 : i32
    %c0_i32_0 = arith.constant 0 : i32
    %c0_i32_1 = arith.constant 0 : i32
    return %c0_i32, %c0_i32_0 : i32, i32
  }
  func.func @transform_5(%arg0: i32) -> (i32, i32) {
    %c0_i32 = arith.constant 0 : i32
    %c0_i32_0 = arith.constant 0 : i32
    return %c0_i32, %arg0 : i32, i32
  }
  func.func @transform_6(%arg0: i32) -> (i32, i32) {
    %c0_i32 = arith.constant 0 : i32
    %c0_i32_0 = arith.constant 0 : i32
    return %c0_i32, %arg0 : i32, i32
  }
}

</mosaic_0001>

<bundles_post_ra>
// kernel: tpu_custom_call.1
= control target key start
LH: loop header
LB: loop body
LE: loop exit
PB: predicated region body
PF: predicated region fallthrough
CT: control target
= control target key end

     0   :  { %12 = vsyncpa [#allocation3], 0  ;;  %vm38_vm0 = vcmask 1045504   ;;  %vm34_vm1 = vcmask 48128   ;;  %v221_v2 = vmov 0   ;;  %s289_s0 = inlined_call_operand.vmem [shape: f32[6,8], index: 0, kind: input, shape index: {}]   ;;  %s290_s1 = inlined_call_operand.vmem [shape: f32[2,8], index: 1, kind: input, shape index: {}]   ;;  %s291_s2 = inlined_call_operand.vmem [shape: f32[8,6], index: 2, kind: input, shape index: {}]   ;;  %s292_s3 = inlined_call_operand.vmem [shape: f32[16,8], index: 3, kind: input, shape index: {}]   ;;  %s293_s4 = inlined_call_operand.vmem [shape: f32[24,1], index: 4, kind: input, shape index: {}]   ;;  %s294_s5 = inlined_call_operand.hbm [shape: f32[2,8], index: 5, kind: output, shape index: {0}]   ;;  %s295_s6 = inlined_call_operand.hbm [shape: f32[1,8], index: 6, kind: output, shape index: {1}]  }
   0x1   :  { %v28_v0 = vld [vmem:[%s289_s0] sm:$0x3f]  ;;  %165 = vset.pattern.permute.xlu0 %v221_v2 }
   0x2   :  { %v27_v1 = vld [vmem:[%s291_s2] sm:$0xff]  ;;  %157 = vmatpush.msk.msra.mxu0 %vm38_vm0, %v28_v0 }
   0x3   :  { %v24_v3 = vld [vmem:[%s293_s4] sm:$0xff] }
   0x4   :  { %13 = vsyncpa [#allocation5], 0  ;;  %158 = vmatmul.msk.f32.vlgmr.msra.gmra.mxu0 %vm34_vm1, %v27_v1  ;;  %31 = vperm.xlu0 %165, %v24_v3   ;;  %v26_v4 = vld [vmem:[%s293_s4 + $0x10] sm:$0xff]  ;;  %v25_v5 = vld [vmem:[%s293_s4 + $0x8] sm:$0xff]  ;;  %vm75_vm2 = vcmask 64512   ;;  %s222_s10 = smov [#allocation2]  }
   0x5   :  { %166 = vset.pattern.permute.xlu1 %v221_v2  ;;  %v64_v10 = vld [vmem:[%s292_s3 + $0x8] sm:$0xff]  ;;  %v63_v11 = vld [vmem:[%s292_s3] sm:$0xff]  ;;  %s130_s3 = sshll.u32 %s222_s10, 4  ;;  %s132_s13 = sshll.u32 %s294_s5, 4  ;;  %vm110_vm3 = vcmask 58368   ;;  %vm123_vm4 = vcmask 57344   ;;  %s131_s3 = int_to_ptr.vmem [resolvable:$true] %s130_s3  ;;  %s133_s13 = int_to_ptr.hbm [resolvable:$true] %s132_s13 }
   0x6   :  { %67 = vperm.xlu1 %166, %v25_v5   ;;  %v107_v19 = vld [vmem:[%s290_s1] sm:$0x3]  ;;  %s223_s1 = smov [#allocation4]   ;;  %s143_s5 = sshll.u32 %s295_s6, 4  ;;  %s144_s5 = int_to_ptr.hbm [resolvable:$true] %s143_s5 }
   0x7   :  { %s141_s14 = sshll.u32 %s223_s1, 4  ;;  %s142_s14 = int_to_ptr.vmem [resolvable:$true] %s141_s14 }
   0xc   :  { %72 = vperm.xlu0 %165, %v26_v4  }
  0x76   :  { %v32_v6 = vpop.permute.xlu0 %31 }
  0x78   :  { %v68_v16 = vpop.permute.xlu1 %67 }
  0x7e   :  { %v73_v12 = vpop.permute.xlu0 %72 }
  0x81   :  { %v59_v7 = vpop.f32.mrf.mxu0 }
  0x82   :  { %v60_v8 = vadd.f32 %v59_v7, %v32_v6 }
  0x84   :  { %v62_v9 = vmax.f32 %v60_v8, 0.0 }
  0x86   :  { %97 = vmatpush.msra.mxu1 %v62_v9  ;;  %161 = vmatpush.msra.mxu2 %v62_v9 }
  0x87   :  { %160 = vmatmul.msk.f32.vlgmr.msra.gmra.mxu2 %vm75_vm2, %v64_v10  ;;  %159 = vmatmul.msk.f32.vlgmr.msra.gmra.mxu1 %vm75_vm2, %v63_v11 }
 0x104   :  { %v99_v17 = vpop.f32.mrf.mxu1 }
 0x105   :  { %v100_v18 = vadd.f32 %v99_v17, %v68_v16 }
 0x107   :  { %v113_v20 = vmul.f32 %v100_v18, %v100_v18 }
 0x10a   :  { %v102_v13 = vpop.f32.mrf.mxu2 }
 0x10b   :  { %v103_v14 = vadd.f32 %v102_v13, %v73_v12 }
 0x10d   :  { %v105_v15 = vmul.f32 1.442695, %v103_v14 }
 0x10f   :  { %167 = vpow2.f32 %v105_v15 }
 0x115   :  { %v168_v21 = vpop.eup %167 }
 0x116   :  { %v108_v22 = vmul.f32 %v168_v21, %v107_v19  ;;  %v112_v23 = vmul.f32 %v168_v21, %v168_v21 }
 0x118   :  { %v109_v24 = vadd.f32 %v108_v22, %v100_v18  ;;  %v114_v25 = vadd.f32 %v113_v20, %v112_v23 }
 0x11a   :  { %111 = vst.msk [vmem:[#allocation2] sm:$0x3] %vm110_vm3, %v109_v24  ;;  %v115_v26 = vsub.f32 %v114_v25, %v103_v14 }
 0x11b   :  { %135 = dma.vmem_to_hbm [thread:$0]  %s131_s3, 32, %s133_s13, [#allocation3]  }
 0x11c   :  { %v116_v27 = vsel %vm110_vm3, %v115_v26, 0.0 }
 0x11d   :  { %v117_v28 = vrot.slane %v116_v27, 4 }
 0x11f   :  { %v118_v29 = vadd.f32 %v117_v28, %v116_v27 }
 0x121   :  { %v119_v30 = vrot.slane %v118_v29, 2 }
 0x123   :  { %v120_v31 = vadd.f32 %v119_v30, %v118_v29 }
 0x125   :  { %v121_v32 = vrot.slane %v120_v31, 1 }
 0x127   :  { %v122_v33 = vadd.f32 %v121_v32, %v120_v31 }
 0x129   :  { %124 = vst.msk [vmem:[#allocation4] sm:$0x1] %vm123_vm4, %v122_v33 }
 0x12a   :  { %146 = dma.vmem_to_hbm [thread:$0]  %s142_s14, 16, %s144_s5, [#allocation5]  }
 0x12b   :  { %217 = dma.done.wait [#allocation3], 32  }
 0x12c   :  { %218 = vsyncadd [#allocation3], 4294967264 }
 0x12d   :  { %219 = dma.done.wait [#allocation5], 16  }
 0x12e   :  { %220 = vsyncadd [#allocation5], 4294967280 }
 0x12f   :  { %155 = vsyncpa [#allocation3], 1 }
 0x130   :  { %156 = vsyncpa [#allocation5], 1 }

</bundles_post_ra>
